<compile_context>
chip_gen: v6e
topology: v6e:2x2x1
jax: 0.10.0
libtpu: 0.0.40
codegen_flags: <defaults>
</compile_context>

<pallas_src>
import jax
import jax.numpy as jnp
from jax.experimental import pallas as pl
from jax.experimental.pallas import tpu as pltpu

# norse default cell constants (compile-time)
DT = 1e-3
V_LEAK = 0.0
V_TH = 1.0
V_RESET = 0.0

# Tiling knobs
LANE_W = 1024                    # lane-dense last dim (multiple of 128)
TM_MAX = 1024                    # max rows/tile: 1024x1024 f32 = 4 MiB per stream
VMEM_LIMIT = 48 * 1024 * 1024    # 4 streams x 2 bufs x 4 MiB = 32 MiB < 48 MiB (< v7x 64 MiB physical)


def _round_up(x: int, m: int) -> int:
    return (x + m - 1) // m * m


# ----------------------------- Pallas kernels -----------------------------

def _relu_kernel(x_ref, o_ref):
    o_ref[...] = jnp.maximum(x_ref[...], 0.0).astype(o_ref.dtype)


def _lif_kernel(alpha_ref, x_ref, v_ref, z_ref, v_out_ref):
    # alpha = dt * tau_mem_inv (folded once; scalar-prefetch SMEM ref)
    alpha = alpha_ref[0]
    v = v_ref[...]
    v_dec = v + alpha * (x_ref[...] - v)            # V_LEAK == 0
    spike = v_dec > V_TH                            # heaviside (strict >)
    z_ref[...] = spike.astype(z_ref.dtype)
    v_out_ref[...] = jnp.where(spike, V_RESET, v_dec).astype(v_out_ref.dtype)


def _lif_first_kernel(alpha_ref, x_ref, z_ref, v_out_ref):
    # first step: v == V_LEAK == 0 baked in as a constant
    alpha = alpha_ref[0]
    v_dec = alpha * x_ref[...]
    spike = v_dec > V_TH
    z_ref[...] = spike.astype(z_ref.dtype)
    v_out_ref[...] = jnp.where(spike, V_RESET, v_dec).astype(v_out_ref.dtype)


def _li_relu_kernel(alpha_ref, x_ref, v_ref, y_ref, v_out_ref):
    alpha = alpha_ref[0]
    v = v_ref[...]
    v_new = v + alpha * (x_ref[...] - v)            # V_LEAK == 0
    v_out_ref[...] = v_new.astype(v_out_ref.dtype)
    y_ref[...] = jnp.maximum(v_new, 0.0).astype(y_ref.dtype)   # trailing ReLU


def _li_relu_first_kernel(alpha_ref, x_ref, y_ref, v_out_ref):
    alpha = alpha_ref[0]
    v_new = alpha * x_ref[...]
    v_out_ref[...] = v_new.astype(v_out_ref.dtype)
    y_ref[...] = jnp.maximum(v_new, 0.0).astype(y_ref.dtype)


# ----------------------------- pallas_call glue -----------------------------

_MOSAIC = pltpu.CompilerParams(
    dimension_semantics=("parallel",),
    vmem_limit_bytes=VMEM_LIMIT,
)


def _pick_tm(rows: int) -> int:
    # Aim for >= ~4 grid steps so the "parallel" axis can shard across both
    # TensorCores on v7x, while capping the tile at TM_MAX rows (VMEM budget).
    tm = _round_up(pl.cdiv(rows, 4), 8)
    return max(8, min(tm, TM_MAX, rows))


def _relu_call(x2d):
    rows, lane = x2d.shape
    tm = _pick_tm(rows)
    tile = pl.BlockSpec((tm, lane), lambda i: (i, 0))
    return pl.pallas_call(
        _relu_kernel,
        out_shape=jax.ShapeDtypeStruct(x2d.shape, x2d.dtype),
        grid=(pl.cdiv(rows, tm),),
        in_specs=[tile],
        out_specs=tile,
        compiler_params=_MOSAIC,
    )(x2d)


def _first_step_call(kernel, alpha, x2d):
    rows, lane = x2d.shape
    tm = _pick_tm(rows)
    tile = pl.BlockSpec((tm, lane), lambda i, alpha_ref: (i, 0))
    gs = pltpu.PrefetchScalarGridSpec(
        num_scalar_prefetch=1,
        grid=(pl.cdiv(rows, tm),),
        in_specs=[tile],
        out_specs=(tile, tile),
    )
    out_shape = (jax.ShapeDtypeStruct(x2d.shape, x2d.dtype),   # z / y
                 jax.ShapeDtypeStruct(x2d.shape, x2d.dtype))   # v_new
    return pl.pallas_call(
        kernel,
        out_shape=out_shape,
        grid_spec=gs,
        compiler_params=_MOSAIC,
    )(alpha, x2d)


def _stateful_call(kernel, alpha, x2d, v2d):
    rows, lane = x2d.shape
    tm = _pick_tm(rows)
    tile = pl.BlockSpec((tm, lane), lambda i, alpha_ref: (i, 0))
    gs = pltpu.PrefetchScalarGridSpec(
        num_scalar_prefetch=1,
        grid=(pl.cdiv(rows, tm),),
        in_specs=[tile, tile],
        out_specs=(tile, tile),
    )
    out_shape = (jax.ShapeDtypeStruct(x2d.shape, x2d.dtype),   # z / y
                 jax.ShapeDtypeStruct(v2d.shape, v2d.dtype))   # v_new
    return pl.pallas_call(
        kernel,
        out_shape=out_shape,
        grid_spec=gs,
        # Flat operand order is (alpha, x, v): scalar-prefetch operands count
        # toward input_output_aliases indices (same convention as the JAX
        # ragged-paged-attention kernels), so index 2 == v -> output 1 (v_new).
        input_output_aliases={2: 1},
        compiler_params=_MOSAIC,
    )(alpha, x2d, v2d)


# ----------------------------- layout helpers -----------------------------

def _pack_2d(x):
    """Flatten to a lane-dense (rows, lane) slab; rows padded only to a multiple of 8."""
    total = x.size
    flat = x.reshape(-1)
    lane = LANE_W if total >= LANE_W else _round_up(max(total, 1), 128)
    rows = _round_up(pl.cdiv(total, lane), 8)
    padded = rows * lane
    if padded != total:
        flat = jnp.pad(flat, (0, padded - total))   # small tail pad only
    return flat.reshape(rows, lane)


def _unpack(slab, total, shape):
    return slab.reshape(-1)[:total].reshape(shape)


class TemporalState:
    """Membrane potential carried between timesteps in packed (rows, lane) form."""
    __slots__ = ("v2d", "shape", "total")

    def __init__(self, v2d, shape, total):
        self.v2d = v2d
        self.shape = shape
        self.total = total

    def dense(self):
        return _unpack(self.v2d, self.total, self.shape)


# ----------------------------- Module wrapper -----------------------------

class TemporalRF:
    """JAX/Pallas port of the PyTorch TemporalRF module (single-step cell)."""

    def __init__(self, tau: float, activation: str, init_scheme: str = "default",
                 device: str = ""):
        self.activation = activation.lower()
        if self.activation in ("lif", "li"):
            # learnable parameter tau_mem_inv, initialized deterministically to `tau`
            # TODO(synk): parameter is traced (differentiable) but no optimizer/training here.
            self.tau_mem_inv = jnp.asarray([tau], dtype=jnp.float32)
        elif self.activation == "relu":
            self.tau_mem_inv = None
        else:
            raise ValueError(f"Unknown activation function: {activation}")

    def __call__(self, x, state=None):
        # x: NCHW tensor.  state: TemporalState (packed), dense v array, or None.
        orig_shape = x.shape
        total = x.size
        x2d = _pack_2d(x)

        if self.activation == "relu":
            y2d = _relu_call(x2d)
            return _unpack(y2d, total, orig_shape), [None]

        alpha = (self.tau_mem_inv * DT).astype(jnp.float32)   # fold dt * tau once

        if state is None:
            kernel = _lif_first_kernel if self.activation == "lif" else _li_relu_first_kernel
            y2d, v2d_new = _first_step_call(kernel, alpha, x2d)
        else:
            if isinstance(state, TemporalState) and state.v2d.shape == x2d.shape:
                v2d = state.v2d                      # carried packed: no pack/unpack per step
            elif isinstance(state, TemporalState):
                v2d = _pack_2d(state.dense())
            else:
                v2d = _pack_2d(state)                # dense array state (compat path)
            kernel = _lif_kernel if self.activation == "lif" else _li_relu_kernel
            y2d, v2d_new = _stateful_call(kernel, alpha, x2d, v2d)

        return _unpack(y2d, total, orig_shape), TemporalState(v2d_new, orig_shape, total)


# ----------------------------- reference (plain JAX) -----------------------------

def _ref_forward(activation, tau, x, v):
    if activation == "relu":
        return jnp.maximum(x, 0.0), None
    dv = DT * tau * ((V_LEAK - v) + x)
    v_dec = v + dv
    if activation == "lif":
        z = (v_dec - V_TH > 0.0).astype(x.dtype)
        return z, (1.0 - z) * v_dec + z * V_RESET
    return jnp.maximum(v_dec, 0.0), v_dec   # 'li' + ReLU


if __name__ == "__main__":
    key = jax.random.PRNGKey(0)
    tau = 100.0  # norse default tau_mem_inv

    ok = True
    # small shape from the module spec + a larger one exercising the multi-tile grid
    for shape in ((2, 4, 16, 16), (4, 32, 64, 64)):
        k1, k2 = jax.random.split(jax.random.fold_in(key, shape[1]))
        x0 = jax.random.normal(k1, shape, dtype=jnp.float32) * 5.0
        x1 = jax.random.normal(k2, shape, dtype=jnp.float32) * 5.0

        for act in ("relu", "lif", "li"):
            mod = TemporalRF(tau=tau, activation=act, init_scheme="default", device="")
            # step 1 (state=None -> initialized to v_leak inside the kernel)
            y0, s0 = mod(x0, None)
            # step 2 (carry packed state)
            y1, s1 = mod(x1, None if act == "relu" else s0)
            jax.block_until_ready(y1)

            # reference
            v_ref = jnp.zeros_like(x0) + V_LEAK
            ry0, rv0 = _ref_forward(act, tau, x0, v_ref)
            ry1, rv1 = _ref_forward(act, tau, x1, rv0 if rv0 is not None else v_ref)

            ok &= bool(jnp.allclose(y0, ry0, atol=1e-5, rtol=1e-5))
            ok &= bool(jnp.allclose(y1, ry1, atol=1e-5, rtol=1e-5))
            if act != "relu":
                ok &= bool(jnp.allclose(s0.dense(), rv0, atol=1e-5, rtol=1e-5))
                ok &= bool(jnp.allclose(s1.dense(), rv1, atol=1e-5, rtol=1e-5))

        # compatibility path: dense (unpacked) state array passed in
        mod = TemporalRF(tau=tau, activation="lif")
        _, s0 = mod(x0, None)
        y_dense, s_dense = mod(x1, s0.dense())
        jax.block_until_ready(y_dense)
        v_ref = jnp.zeros_like(x0)
        _, rv0 = _ref_forward("lif", tau, x0, v_ref)
        ry1, rv1 = _ref_forward("lif", tau, x1, rv0)
        ok &= bool(jnp.allclose(y_dense, ry1, atol=1e-5, rtol=1e-5))
        ok &= bool(jnp.allclose(s_dense.dense(), rv1, atol=1e-5, rtol=1e-5))

    if not ok:
        raise SystemExit("KERNEL_MISMATCH")
    print("KERNEL_OK")
</pallas_src>

<mosaic_0001>
module attributes {stable_mosaic.version = 11 : i64} {
  func.func @_relu_kernel(%arg0: i32, %arg1: memref<8x1024xf32, #tpu.memory_space<vmem>>, %arg2: memref<8x1024xf32, #tpu.memory_space<vmem>>) attributes {dimension_semantics = [#tpu.dimension_semantics<parallel>], iteration_bounds = array<i64: 1>, scalar_prefetch = 0 : i64, scratch_operands = 0 : i64, tpu.core_type = #tpu.core_type<tc>, window_params = [{transform_indices = @transform_0, window_bounds = array<i64: 8, 1024>}, {transform_indices = @transform_1, window_bounds = array<i64: 8, 1024>}]} {
    %c0 = arith.constant 0 : index
    %c0_0 = arith.constant 0 : index
    %0 = vector.load %arg1[%c0, %c0_0] : memref<8x1024xf32, #tpu.memory_space<vmem>>, vector<8x1024xf32>
    %cst = arith.constant 0.000000e+00 : f32
    %1 = vector.broadcast %cst : f32 to vector<8x1024xf32>
    %2 = arith.maximumf %0, %1 : vector<8x1024xf32>
    %c0_1 = arith.constant 0 : index
    %c0_2 = arith.constant 0 : index
    %3 = vector.load %arg2[%c0_1, %c0_2] : memref<8x1024xf32, #tpu.memory_space<vmem>>, vector<8x1024xf32>
    tpu.vector_store %arg2[%c0_1, %c0_2], %2 {strides = array<i32>} : memref<8x1024xf32, #tpu.memory_space<vmem>>, vector<8x1024xf32>,
    return
  }
  func.func @transform_0(%arg0: i32) -> (i32, i32) {
    %c0_i32 = arith.constant 0 : i32
    %c0_i32_0 = arith.constant 0 : i32
    return %arg0, %c0_i32 : i32, i32
  }
  func.func @transform_1(%arg0: i32) -> (i32, i32) {
    %c0_i32 = arith.constant 0 : i32
    %c0_i32_0 = arith.constant 0 : i32
    return %arg0, %c0_i32 : i32, i32
  }
}

</mosaic_0001>

<bundles_post_ra>
// kernel: tpu_custom_call.1
= control target key start
LH: loop header
LB: loop body
LE: loop exit
PB: predicated region body
PF: predicated region fallthrough
CT: control target
= control target key end

     0   :  { %6 = vsyncpa [#allocation3], 0  ;;  %s124_s0 = inlined_call_operand.hbm [shape: f32[8,1024], index: 0, kind: input, shape index: {}]   ;;  %s125_s1 = inlined_call_operand.hbm [shape: f32[8,1024], index: 1, kind: output, shape index: {}]  }
   0x1   :  { %7 = vsyncpa [#allocation4], 0  ;;  %s106_s6 = smov [#allocation2]  }
   0x2   :  { %s14_s7 = sshll.u32 %s106_s6, 4  ;;  %s15_s7 = int_to_ptr.vmem [resolvable:$true] %s14_s7 }
   0x3   :  { %s70_s8 = scalar_lea.vmem %s15_s7, 1024  ;;  %p75_p1 = scmp.lt.s32.totalorder %s15_s7, %s15_s7 }
   0x4   :  { %p71_p0 = scmp.ne.s32.totalorder %s15_s7, %s70_s8  ;;  %p76_p2 = scmp.lt.s32.totalorder %s70_s8, %s70_s8 }
   0x6   :  { %p77_p3 = por %p76_p2, %p75_p1 }
   0x8   :  { %p78_p4 = pnand %p77_p3, %p71_p0 }
   0xa   :  { %81 = shalt.err (!%p78_p4)
}
   0xb   :  { %17 = dma.hbm_to_vmem [thread:$0]  %s124_s0, 1024, %s15_s7, [#allocation3]  }
   0xc   :  { %102 = dma.done.wait [#allocation3], 1024  }
   0xd   :  { %103 = vsyncadd [#allocation3], 4294966272  ;;  %v21_v0 = vld [vmem:[#allocation2] sm:$0xff]  ;;  %v22_v1 = vld [vmem:[#allocation2 + $0x8] sm:$0xff]  ;;  %s107_s11 = smov [#allocation5]  }
   0xe   :  { %v23_v2 = vld [vmem:[#allocation2 + $0x10] sm:$0xff]  ;;  %s51_s12 = sshll.u32 %s107_s11, 4  ;;  %v29_v3 = vmax.f32 %v21_v0, 0.0  ;;  %v30_v4 = vmax.f32 %v22_v1, 0.0  ;;  %v24_v6 = vld [vmem:[#allocation2 + $0x18] sm:$0xff]  ;;  %v25_v7 = vld [vmem:[#allocation2 + $0x20] sm:$0xff]  ;;  %s52_s12 = int_to_ptr.vmem [resolvable:$true] %s51_s12 }
   0xf   :  { %v31_v5 = vmax.f32 %v23_v2, 0.0  ;;  %v26_v8 = vld [vmem:[#allocation2 + $0x28] sm:$0xff]  ;;  %v32_v9 = vmax.f32 %v24_v6, 0.0  ;;  %v33_v10 = vmax.f32 %v25_v7, 0.0  ;;  %v27_v12 = vld [vmem:[#allocation2 + $0x30] sm:$0xff]  ;;  %v28_v13 = vld [vmem:[#allocation2 + $0x38] sm:$0xff]  ;;  %p87_p6 = scmp.lt.s32.totalorder %s52_s12, %s52_s12 }
  0x10   :  { %v34_v11 = vmax.f32 %v26_v8, 0.0  ;;  %37 = vst [vmem:[#allocation5] sm:$0xff] %v29_v3  ;;  %38 = vst [vmem:[#allocation5 + $0x8] sm:$0xff] %v30_v4  ;;  %v35_v14 = vmax.f32 %v27_v12, 0.0  ;;  %v36_v15 = vmax.f32 %v28_v13, 0.0  ;;  %s82_s0 = scalar_lea.vmem %s52_s12, 1024 }
  0x11   :  { %39 = vst [vmem:[#allocation5 + $0x10] sm:$0xff] %v31_v5  ;;  %40 = vst [vmem:[#allocation5 + $0x18] sm:$0xff] %v32_v9  ;;  %p83_p5 = scmp.ne.s32.totalorder %s52_s12, %s82_s0  ;;  %p88_p7 = scmp.lt.s32.totalorder %s82_s0, %s82_s0 }
  0x12   :  { %41 = vst [vmem:[#allocation5 + $0x20] sm:$0xff] %v33_v10  ;;  %42 = vst [vmem:[#allocation5 + $0x28] sm:$0xff] %v34_v11 }
  0x13   :  { %43 = vst [vmem:[#allocation5 + $0x30] sm:$0xff] %v35_v14  ;;  %44 = vst [vmem:[#allocation5 + $0x38] sm:$0xff] %v36_v15  ;;  %p89_p8 = por %p88_p7, %p87_p6 }
  0x15   :  { %p90_p9 = pnand %p89_p8, %p83_p5 }
  0x17   :  { %93 = shalt.err (!%p90_p9)
}
  0x18   :  { %54 = dma.vmem_to_hbm [thread:$0]  %s52_s12, 1024, %s125_s1, [#allocation4]  }
  0x19   :  { %104 = dma.done.wait [#allocation4], 1024  }
  0x1a   :  { %105 = vsyncadd [#allocation4], 4294966272 }
  0x1b   :  { %58 = vsyncpa [#allocation3], 1 }
  0x1c   :  { %59 = vsyncpa [#allocation4], 1 }

</bundles_post_ra>
